<compile_context>
chip_gen: v7x
topology: tpu7x:2x2x1
jax: 0.10.0
libtpu: 0.0.40
codegen_flags: <defaults>
</compile_context>

<pallas_src>
import inspect

import jax
import jax.numpy as jnp
from jax.experimental import pallas as pl
from jax.experimental.pallas import tpu as pltpu


def _round_up(x, m):
    return ((x + m - 1) // m) * m


def _vmem_capacity_bytes():
    """Per-core VMEM capacity; conservative fallback if the query fails."""
    try:
        cap = getattr(pltpu.get_tpu_info(), "vmem_capacity_bytes", None)
        if cap:
            return int(cap)
    except Exception:
        pass
    return 64 * 2 ** 20  # v7x per-TensorCore VMEM (smallest of v5e/v6e/v7x)


try:
    _SUPPORTS_PIPELINE_MODE = hasattr(pl, "Buffered") and (
        "pipeline_mode" in inspect.signature(pl.BlockSpec).parameters)
except Exception:  # pragma: no cover - very old/odd JAX builds
    _SUPPORTS_PIPELINE_MODE = False


def _auto_param_dtype():
    """bf16 weights on chips whose MXU is not f32-friendly (v5e, v7x, ...)."""
    try:
        kind = jax.devices()[0].device_kind.lower()
    except Exception:
        return None
    if "v6" in kind:  # v6e: keep f32 by default (128 MiB VMEM, MXU slack)
        return None
    return jnp.bfloat16


def _vmem_need_bytes(tile_b, D, x_item, w_item, weight_bufs):
    """VMEM footprint estimate, including the f32 intermediate h."""
    weights = weight_bufs * (D * D * w_item + D * 4 + D * w_item + 4)
    x_tiles = 2 * tile_b * D * x_item          # double-buffered activation tile
    interm = 3 * tile_b * D * 4                # h (f32), MXU accumulator, cast scratch
    out_t = 2 * tile_b * 4
    return int(weights + x_tiles + interm + out_t)


def _esm_mean_kernel(x_ref, w1t_ref, b1_ref, w2c_ref, b2_ref, o_ref):
    """One batch tile: y = ReLU(x @ W1t + b1) @ W2c + b2."""
    x = x_ref[...]                                   # (TB, D)
    w1t = w1t_ref[...]                               # (D, D), already (in, out)
    if w1t.dtype != x.dtype:
        x = x.astype(w1t.dtype)                      # homogeneous MXU operands
    # First Linear: standard-orientation MXU matmul (no per-tile W1 transpose),
    # f32 accumulation.
    h = jnp.dot(x, w1t, preferred_element_type=jnp.float32)   # (TB, D) f32
    # Fused bias + ReLU: a single VPU pass over h.
    h = jnp.maximum(h + b1_ref[...], 0.0)
    # Second Linear (out_features = 1) on the MXU: avoids a second full VPU
    # pass + cross-lane XLU reduction over the (TB, D) intermediate.
    w2c = w2c_ref[...]                               # (D, 1)
    h2 = h if w2c.dtype == h.dtype else h.astype(w2c.dtype)
    y = jnp.dot(h2, w2c, preferred_element_type=jnp.float32)  # (TB, 1)
    o_ref[...] = (y + b2_ref[...]).astype(o_ref.dtype)


def esm_attention1d_mean_forward(x, w1, b1, w2, b2, *, tile_b=None,
                                 param_dtype="auto",
                                 single_buffer_weights=None):
    """Forward pass of ESMAttention1dMean.

    x : (B, D) mean-pooled embeddings.
    w1: (D, D), b1: (D,), w2: (1, D), b2: (1,) in PyTorch nn.Linear layout
        (weight rows = output features); semantics are y = x @ W.T + b.
    param_dtype: "auto" (bf16 on v5e/v7x, f32 on v6e), an explicit dtype, or
        None (keep the weights' own dtype).
    """
    B, D = x.shape
    assert w1.shape == (D, D) and b1.shape == (D,)
    assert w2.shape == (1, D) and b2.shape == (1,)

    if isinstance(param_dtype, str) and param_dtype == "auto":
        param_dtype = _auto_param_dtype()
    if param_dtype is None:
        param_dtype = w1.dtype

    # One-time weight prep (amortized over all batch tiles; callers that reuse
    # the module across many forwards should hoist these casts/transposes).
    w1t = jnp.transpose(w1).astype(param_dtype)          # (D, D): x @ W1.T == x @ w1t
    w2c = jnp.reshape(w2, (D, 1)).astype(param_dtype)    # (D, 1): layout-preserving
    b1r = b1.reshape(1, D).astype(jnp.float32)
    b2r = b2.reshape(1, 1).astype(jnp.float32)

    x_item = jnp.dtype(x.dtype).itemsize
    w_item = jnp.dtype(param_dtype).itemsize
    vmem_cap = _vmem_capacity_bytes()

    # Single-buffer the resident weights when their default double-buffered
    # footprint would eat a big slice of VMEM (large D; v7x has only 64 MiB).
    if single_buffer_weights is None:
        single_buffer_weights = (2 * D * D * w_item > vmem_cap // 3)
    single_buffer_weights = bool(single_buffer_weights) and _SUPPORTS_PIPELINE_MODE
    weight_bufs = 1 if single_buffer_weights else 2

    # MXU-M-aligned batch tile, as large as the VMEM budget allows (amortizes
    # the ~0.35us per-grid-step overhead; tiny tiles waste MXU rows).
    if tile_b is None:
        for cand in (1024, 512, 256, 128):
            if cand <= B and (_vmem_need_bytes(cand, D, x_item, w_item, weight_bufs)
                              <= 0.55 * vmem_cap):
                tile_b = cand
                break
        else:
            tile_b = max(8, _round_up(min(B, 128), 8))
    tile_b = max(8, _round_up(tile_b, 8))
    grid = (pl.cdiv(B, tile_b),)   # pad-free: the ragged tail block is masked

    need = _vmem_need_bytes(tile_b, D, x_item, w_item, weight_bufs)
    vmem_limit = int(min(max(need + (16 << 20), 32 << 20), vmem_cap - (8 << 20)))

    cost = pl.CostEstimate(
        flops=2 * B * D * D + 2 * B * D,
        bytes_accessed=(B * D * x_item + D * D * w_item + D * (w_item + 4)
                        + B * x_item),
        transcendentals=0)

    def _run(use_single_buffer):
        res_kw = ({"pipeline_mode": pl.Buffered(1)} if use_single_buffer else {})
        in_specs = [
            pl.BlockSpec((tile_b, D), lambda i: (i, 0)),        # x: batch-tiled, double-buffered
            pl.BlockSpec((D, D), lambda i: (0, 0), **res_kw),   # W1^T: VMEM-resident
            pl.BlockSpec((1, D), lambda i: (0, 0), **res_kw),   # b1: resident
            pl.BlockSpec((D, 1), lambda i: (0, 0), **res_kw),   # W2 column: resident
            pl.BlockSpec((1, 1), lambda i: (0, 0), **res_kw),   # b2: resident
        ]
        return pl.pallas_call(
            _esm_mean_kernel,
            out_shape=jax.ShapeDtypeStruct((B, 1), x.dtype),
            grid_spec=pl.GridSpec(
                grid=grid,
                in_specs=in_specs,
                out_specs=pl.BlockSpec((tile_b, 1), lambda i: (i, 0)),
            ),
            compiler_params=pltpu.CompilerParams(
                dimension_semantics=("parallel",),   # megacore sharding on v7x
                vmem_limit_bytes=vmem_limit),
            cost_estimate=cost,
        )(x, w1t, b1r, w2c, b2r)

    if single_buffer_weights:
        try:
            return _run(True)
        except Exception:
            # Buffered(1)/pipeline_mode rejected by this JAX/Mosaic build:
            # fall back to the plain (double-buffered resident weights) path.
            return _run(False)
    return _run(False)


def _reference(x, w1, b1, w2, b2):
    h = jnp.maximum(x @ w1.T + b1, 0.0)
    return h @ w2.T + b2


if __name__ == "__main__":
    key = jax.random.PRNGKey(0)
    B, D = 40, 256      # small demo shapes; D lane-aligned (multiple of 128)

    k_x, k_w1, k_b1, k_w2, k_b2 = jax.random.split(key, 5)
    x = jax.random.normal(k_x, (B, D), dtype=jnp.float32)

    bound = 1.0 / (D ** 0.5)     # torch nn.Linear default init scale
    w1 = jax.random.uniform(k_w1, (D, D), jnp.float32, -bound, bound)
    b1 = jax.random.uniform(k_b1, (D,), jnp.float32, -bound, bound)
    w2 = jax.random.uniform(k_w2, (1, D), jnp.float32, -bound, bound)
    b2 = jax.random.uniform(k_b2, (1,), jnp.float32, -bound, bound)

    y_ref_f32 = _reference(x, w1, b1, w2, b2)
    y_ref_bf16 = _reference(
        x.astype(jnp.bfloat16).astype(jnp.float32),
        w1.astype(jnp.bfloat16).astype(jnp.float32), b1,
        w2.astype(jnp.bfloat16).astype(jnp.float32), b2)

    # 1) f32 weights, default tile (single block for this small B).
    y = jax.block_until_ready(
        esm_attention1d_mean_forward(x, w1, b1, w2, b2, param_dtype=jnp.float32))
    assert y.shape == (B, 1), y.shape
    assert jnp.allclose(y, y_ref_f32, atol=3e-3, rtol=3e-3), "f32 mismatch"

    # 2) f32 weights, multi-tile grid with a ragged tail (40 = 2*16 + 8):
    #    exercises the pad-free cdiv grid + partial-block masking.
    y_tiled = jax.block_until_ready(
        esm_attention1d_mean_forward(x, w1, b1, w2, b2, tile_b=16,
                                     param_dtype=jnp.float32))
    assert y_tiled.shape == (B, 1), y_tiled.shape
    assert jnp.allclose(y_tiled, y_ref_f32, atol=3e-3, rtol=3e-3), "ragged mismatch"

    # 3) bf16-weight path (x cast to bf16 in-kernel; f32 accumulation/epilogue).
    y_bf16 = jax.block_until_ready(
        esm_attention1d_mean_forward(x, w1, b1, w2, b2,
                                     param_dtype=jnp.bfloat16))
    assert jnp.allclose(y_bf16, y_ref_bf16, atol=2e-2, rtol=2e-2), "bf16 mismatch"

    # 4) chip-default ("auto") parameter dtype.
    auto_dtype = _auto_param_dtype()
    y_auto = jax.block_until_ready(
        esm_attention1d_mean_forward(x, w1, b1, w2, b2))
    y_ref_auto = y_ref_f32 if auto_dtype is None else y_ref_bf16
    tol = 3e-3 if auto_dtype is None else 2e-2
    assert jnp.allclose(y_auto, y_ref_auto, atol=tol, rtol=tol), "auto mismatch"

    print("KERNEL_OK")
</pallas_src>

<mosaic_0001>
module attributes {stable_mosaic.version = 11 : i64} {
  func.func @_esm_mean_kernel(%arg0: i32, %arg1: memref<40x256xf32, #tpu.memory_space<vmem>>, %arg2: memref<256x256xf32, #tpu.memory_space<vmem>>, %arg3: memref<1x256xf32, #tpu.memory_space<vmem>>, %arg4: memref<256x1xf32, #tpu.memory_space<vmem>>, %arg5: memref<1x1xf32, #tpu.memory_space<vmem>>, %arg6: memref<40x1xf32, #tpu.memory_space<vmem>>) attributes {dimension_semantics = [#tpu.dimension_semantics<parallel>], iteration_bounds = array<i64: 1>, scalar_prefetch = 0 : i64, scratch_operands = 0 : i64, tpu.core_type = #tpu.core_type<tc>, window_params = [{transform_indices = @transform_0, window_bounds = array<i64: 40, 256>}, {pipeline_mode = #tpu.pipeline_mode<synchronous>, transform_indices = @transform_1, window_bounds = array<i64: 256, 256>}, {pipeline_mode = #tpu.pipeline_mode<synchronous>, transform_indices = @transform_2, window_bounds = array<i64: 1, 256>}, {pipeline_mode = #tpu.pipeline_mode<synchronous>, transform_indices = @transform_3, window_bounds = array<i64: 256, 1>}, {pipeline_mode = #tpu.pipeline_mode<synchronous>, transform_indices = @transform_4, window_bounds = array<i64: 1, 1>}, {transform_indices = @transform_5, window_bounds = array<i64: 40, 1>}]} {
    %c0 = arith.constant 0 : index
    %c0_0 = arith.constant 0 : index
    %0 = vector.load %arg1[%c0, %c0_0] : memref<40x256xf32, #tpu.memory_space<vmem>>, vector<40x256xf32>
    %c0_1 = arith.constant 0 : index
    %c0_2 = arith.constant 0 : index
    %1 = vector.load %arg2[%c0_1, %c0_2] : memref<256x256xf32, #tpu.memory_space<vmem>>, vector<256x256xf32>
    %cst = arith.constant dense<0.000000e+00> : vector<40x256xf32>
    %2 = tpu.matmul %0, %1, %cst {dimension_numbers = #tpu.dot_dimension_numbers<[1], [0], [0], [1], [0, 0, 1, 1], [], []>} : vector<40x256xf32>, vector<256x256xf32>, vector<40x256xf32> -> vector<40x256xf32>
    %c0_3 = arith.constant 0 : index
    %c0_4 = arith.constant 0 : index
    %3 = vector.load %arg3[%c0_3, %c0_4] : memref<1x256xf32, #tpu.memory_space<vmem>>, vector<1x256xf32>
    %4 = vector.broadcast %3 : vector<1x256xf32> to vector<40x256xf32>
    %5 = arith.addf %2, %4 : vector<40x256xf32>
    %cst_5 = arith.constant 0.000000e+00 : f32
    %6 = vector.broadcast %cst_5 : f32 to vector<40x256xf32>
    %7 = arith.maximumf %5, %6 : vector<40x256xf32>
    %c0_6 = arith.constant 0 : index
    %c0_7 = arith.constant 0 : index
    %8 = vector.load %arg4[%c0_6, %c0_7] : memref<256x1xf32, #tpu.memory_space<vmem>>, vector<256x1xf32>
    %cst_8 = arith.constant dense<0.000000e+00> : vector<40x1xf32>
    %9 = tpu.matmul %7, %8, %cst_8 {dimension_numbers = #tpu.dot_dimension_numbers<[1], [0], [0], [1], [0, 0, 1, 1], [], []>} : vector<40x256xf32>, vector<256x1xf32>, vector<40x1xf32> -> vector<40x1xf32>
    %c0_9 = arith.constant 0 : index
    %c0_10 = arith.constant 0 : index
    %10 = vector.load %arg5[%c0_9, %c0_10] : memref<1x1xf32, #tpu.memory_space<vmem>>, vector<1x1xf32>
    %11 = vector.broadcast %10 : vector<1x1xf32> to vector<40x1xf32>
    %12 = arith.addf %9, %11 : vector<40x1xf32>
    %c0_11 = arith.constant 0 : index
    %c0_12 = arith.constant 0 : index
    %13 = vector.load %arg6[%c0_11, %c0_12] : memref<40x1xf32, #tpu.memory_space<vmem>>, vector<40x1xf32>
    tpu.vector_store %arg6[%c0_11, %c0_12], %12 {strides = array<i32>} : memref<40x1xf32, #tpu.memory_space<vmem>>, vector<40x1xf32>,
    return
  }
  func.func @transform_0(%arg0: i32) -> (i32, i32) {
    %c0_i32 = arith.constant 0 : i32
    %c0_i32_0 = arith.constant 0 : i32
    return %arg0, %c0_i32 : i32, i32
  }
  func.func @transform_1(%arg0: i32) -> (i32, i32) {
    %c0_i32 = arith.constant 0 : i32
    %c0_i32_0 = arith.constant 0 : i32
    %c0_i32_1 = arith.constant 0 : i32
    return %c0_i32, %c0_i32_0 : i32, i32
  }
  func.func @transform_2(%arg0: i32) -> (i32, i32) {
    %c0_i32 = arith.constant 0 : i32
    %c0_i32_0 = arith.constant 0 : i32
    %c0_i32_1 = arith.constant 0 : i32
    return %c0_i32, %c0_i32_0 : i32, i32
  }
  func.func @transform_3(%arg0: i32) -> (i32, i32) {
    %c0_i32 = arith.constant 0 : i32
    %c0_i32_0 = arith.constant 0 : i32
    %c0_i32_1 = arith.constant 0 : i32
    return %c0_i32, %c0_i32_0 : i32, i32
  }
  func.func @transform_4(%arg0: i32) -> (i32, i32) {
    %c0_i32 = arith.constant 0 : i32
    %c0_i32_0 = arith.constant 0 : i32
    %c0_i32_1 = arith.constant 0 : i32
    return %c0_i32, %c0_i32_0 : i32, i32
  }
  func.func @transform_5(%arg0: i32) -> (i32, i32) {
    %c0_i32 = arith.constant 0 : i32
    %c0_i32_0 = arith.constant 0 : i32
    return %arg0, %c0_i32 : i32, i32
  }
}

</mosaic_0001>

<bundles_post_ra>
// kernel: tpu_custom_call.1
= control target key start
LH: loop header
LB: loop body
LE: loop exit
PB: predicated region body
PF: predicated region fallthrough
CT: control target
= control target key end

     0   :  { %s735_s0 = inlined_call_operand.vmem [shape: f32[40,256], index: 0, kind: input, shape index: {}]   ;;  %s736_s1 = inlined_call_operand.hbm [shape: f32[256,256], index: 1, kind: input, shape index: {}]   ;;  %s737_s2 = inlined_call_operand.vmem [shape: f32[1,256], index: 2, kind: input, shape index: {}]   ;;  %s738_s3 = inlined_call_operand.vmem [shape: f32[256,1], index: 3, kind: input, shape index: {}]   ;;  %s739_s4 = inlined_call_operand.<no memory space> [shape: f32[1,1], index: 4, kind: input, shape index: {}]   ;;  %s740_s5 = inlined_call_operand.vmem [shape: f32[40,1], index: 5, kind: output, shape index: {}]  }
   0x1   :  { %v10_v0 = vstv %s739_s4 }
   0x2   :  { %11 = vst [vmem:[#allocation2] sm:$0x1] %v10_v0 }
   0x3   :  { %12 = vsyncpa [#allocation4], 0  ;;  %s538_s20 = smov [#allocation3]   ;;  %s514_s24 = scalar_lea.hbm %s736_s1, 8192 }
   0x4   :  { %s20_s21 = sshll.u32 %s538_s20, 4  ;;  %p515_p0 = scmp.ne.s32.totalorder %s736_s1, %s514_s24  ;;  %s21_s21 = int_to_ptr.vmem [resolvable:$true] %s20_s21 }
   0x5   :  { %p518_p1 = scmp.lt.u32.totalorder %s514_s24, %s736_s1 }
   0x7   :  { %p520_p2 = pnand %p518_p1, %p515_p0 }
   0x9   :  { %523 = shalt.err (!%p520_p2)
}
   0xa   :  { %s524_s4 = scalar_lea.vmem %s21_s21, 8192  ;;  %p529_p4 = scmp.lt.s32.totalorder %s21_s21, %s21_s21 }
   0xb   :  { %p525_p3 = scmp.ne.s32.totalorder %s21_s21, %s524_s4  ;;  %p530_p5 = scmp.lt.s32.totalorder %s524_s4, %s524_s4 }
   0xd   :  { %p531_p6 = por %p530_p5, %p529_p4 }
   0xf   :  { %p532_p7 = pnand %p531_p6, %p525_p3 }
  0x11   :  { %535 = shalt.err (!%p532_p7)
}
  0x12   :  { %s539_s29 = smov 256   ;;  %s540_s30 = smov 16  }
  0x13   :  { %26 = dma.hbm_to_vmem [thread:$0]  %s736_s1, 8192, %s21_s21, [#allocation4], %s539_s29, %s539_s29, %s540_s30  }
  0x14   :  { %536 = dma.done.wait [#allocation4], 8192  }
  0x15   :  { %537 = vsyncadd [#allocation4], 4294959104  ;;  %v47_v1 = vld [vmem:[#allocation3 + $0x8] sm:$0xff]  ;;  %v49_v2 = vld [vmem:[#allocation3 + $0x18] sm:$0xff]  ;;  %vm356_vm0 = vcmask 7168  }
  0x16   :  { %v46_v3 = vld [vmem:[#allocation3] sm:$0xff]  ;;  %v415_v4 = vpack.c.bf16 %v49_v2, %v47_v1  ;;  %v48_v5 = vld [vmem:[#allocation3 + $0x10] sm:$0xff]  ;;  %v51_v6 = vld [vmem:[#allocation3 + $0x28] sm:$0xff] }
  0x17   :  { %v53_v7 = vld [vmem:[#allocation3 + $0x38] sm:$0xff]  ;;  %v417_v8 = vpack.c.bf16 %v48_v5, %v46_v3  ;;  %v50_v10 = vld [vmem:[#allocation3 + $0x20] sm:$0xff]  ;;  %v52_v11 = vld [vmem:[#allocation3 + $0x30] sm:$0xff] }
  0x18   :  { %v419_v9 = vpack.c.bf16 %v53_v7, %v51_v6  ;;  %v55_v12 = vld [vmem:[#allocation3 + $0x48] sm:$0xff]  ;;  %416 = vmatprep.subr.bf16.mxu0 %v415_v4  ;;  %v57_v13 = vld [vmem:[#allocation3 + $0x58] sm:$0xff]  ;;  %v421_v14 = vpack.c.bf16 %v52_v11, %v50_v10  ;;  %v54_v16 = vld [vmem:[#allocation3 + $0x40] sm:$0xff] }
  0x19   :  { %418 = vmatpush1.bf16.msra.mxu0 %v417_v8  ;;  %v423_v15 = vpack.c.bf16 %v57_v13, %v55_v12  ;;  %v56_v17 = vld [vmem:[#allocation3 + $0x50] sm:$0xff]  ;;  %v59_v18 = vld [vmem:[#allocation3 + $0x68] sm:$0xff]  ;;  %v61_v19 = vld [vmem:[#allocation3 + $0x78] sm:$0xff] }
  0x1a   :  { %420 = vmatprep.subr.bf16.mxu0 %v419_v9  ;;  %v425_v20 = vpack.c.bf16 %v56_v17, %v54_v16  ;;  %v427_v21 = vpack.c.bf16 %v61_v19, %v59_v18  ;;  %v58_v22 = vld [vmem:[#allocation3 + $0x60] sm:$0xff]  ;;  %v60_v23 = vld [vmem:[#allocation3 + $0x70] sm:$0xff]  ;;  %v63_v24 = vld [vmem:[#allocation3 + $0x88] sm:$0xff] }
  0x1b   :  { %v65_v25 = vld [vmem:[#allocation3 + $0x98] sm:$0xff]  ;;  %v429_v26 = vpack.c.bf16 %v60_v23, %v58_v22  ;;  %v62_v28 = vld [vmem:[#allocation3 + $0x80] sm:$0xff]  ;;  %v64_v29 = vld [vmem:[#allocation3 + $0x90] sm:$0xff] }
  0x1c   :  { %v431_v27 = vpack.c.bf16 %v65_v25, %v63_v24  ;;  %v67_v30 = vld [vmem:[#allocation3 + $0xa8] sm:$0xff]  ;;  %v69_v31 = vld [vmem:[#allocation3 + $0xb8] sm:$0xff]  ;;  %v433_v32 = vpack.c.bf16 %v64_v29, %v62_v28  ;;  %v66_v34 = vld [vmem:[#allocation3 + $0xa0] sm:$0xff] }
  0x1d   :  { %422 = vmatpush1.bf16.msra.mxu0 %v421_v14  ;;  %v435_v33 = vpack.c.bf16 %v69_v31, %v67_v30  ;;  %v68_v35 = vld [vmem:[#allocation3 + $0xb0] sm:$0xff]  ;;  %v71_v36 = vld [vmem:[#allocation3 + $0xc8] sm:$0xff]  ;;  %v73_v37 = vld [vmem:[#allocation3 + $0xd8] sm:$0xff] }
  0x1e   :  { %424 = vmatprep.subr.bf16.mxu0 %v423_v15  ;;  %v437_v38 = vpack.c.bf16 %v68_v35, %v66_v34  ;;  %v439_v39 = vpack.c.bf16 %v73_v37, %v71_v36  ;;  %v70_v40 = vld [vmem:[#allocation3 + $0xc0] sm:$0xff]  ;;  %v72_v41 = vld [vmem:[#allocation3 + $0xd0] sm:$0xff]  ;;  %v75_v43 = vld [vmem:[#allocation3 + $0xe8] sm:$0xff] }
  0x1f   :  { %v37_v42 = vld [vmem:[%s735_s0 + $0x8] sm:$0xff]  ;;  %v77_v44 = vld [vmem:[#allocation3 + $0xf8] sm:$0xff]  ;;  %v76_v46 = vld [vmem:[#allocation3 + $0xf0] sm:$0xff]  ;;  %v441_v47 = vpack.c.bf16 %v72_v41, %v70_v40 }
  0x20   :  { %186 = vmatprep.mubr.f32.mxu0 %v37_v42  ;;  %v74_v45 = vld [vmem:[#allocation3 + $0xe0] sm:$0xff]  ;;  %v79_v48 = vld [vmem:[#allocation3 + $0x108] sm:$0xff]  ;;  %v81_v49 = vld [vmem:[#allocation3 + $0x118] sm:$0xff]  ;;  %v443_v51 = vpack.c.bf16 %v77_v44, %v75_v43 }
  0x21   :  { %426 = vmatpush1.bf16.msra.mxu0 %v425_v20  ;;  %v243_v50 = vld [vmem:[%s738_s3 + $0x80] sm:$0xff]  ;;  %v244_v52 = vld [vmem:[%s738_s3 + $0x88] sm:$0xff]  ;;  %v245_v57 = vld [vmem:[%s738_s3 + $0x90] sm:$0xff]  ;;  %v445_v0 = vpack.c.bf16 %v76_v46, %v74_v45  ;;  %v447_v1 = vpack.c.bf16 %v81_v49, %v79_v48 }
  0x22   :  { %428 = vmatprep.subr.bf16.mxu0 %v427_v21  ;;  %v227_v53 = vld [vmem:[%s738_s3] sm:$0xff]  ;;  %v228_v54 = vld [vmem:[%s738_s3 + $0x8] sm:$0xff]  ;;  %v479_v55 = vpack.c.bf16 %v244_v52, %v243_v50  ;;  %v246_v58 = vld [vmem:[%s738_s3 + $0x98] sm:$0xff] }
  0x23   :  { %v481_v56 = vpack.c.bf16 %v228_v54, %v227_v53  ;;  %v229_v59 = vld [vmem:[%s738_s3 + $0x10] sm:$0xff]  ;;  %v483_v60 = vpack.c.bf16 %v246_v58, %v245_v57  ;;  %v230_v61 = vld [vmem:[%s738_s3 + $0x18] sm:$0xff]  ;;  %v247_v62 = vld [vmem:[%s738_s3 + $0xa0] sm:$0xff] }
  0x24   :  { %v248_v63 = vld [vmem:[%s738_s3 + $0xa8] sm:$0xff]  ;;  %480 = vmatprep.subr.bf16.mxu1 %v479_v55  ;;  %v80_v3 = vld [vmem:[#allocation3 + $0x110] sm:$0xff]  ;;  %v485_v5 = vpack.c.bf16 %v230_v61, %v229_v59  ;;  %v85_v6 = vld [vmem:[#allocation3 + $0x138] sm:$0xff] }
  0x25   :  { %430 = vmatpush1.bf16.msra.mxu0 %v429_v26  ;;  %v78_v2 = vld [vmem:[#allocation3 + $0x100] sm:$0xff]  ;;  %v83_v4 = vld [vmem:[#allocation3 + $0x128] sm:$0xff]  ;;  %482 = vmatpush3.bf16.msra.mxu1 %v481_v56  ;;  %v487_v7 = vpack.c.bf16 %v248_v63, %v247_v62  ;;  %v250_v11 = vld [vmem:[%s738_s3 + $0xb8] sm:$0xff] }
  0x26   :  { %432 = vmatprep.subr.bf16.mxu0 %v431_v27  ;;  %484 = vmatprep.subr.bf16.mxu1 %v483_v60  ;;  %v231_v8 = vld [vmem:[%s738_s3 + $0x20] sm:$0xff]  ;;  %v232_v9 = vld [vmem:[%s738_s3 + $0x28] sm:$0xff]  ;;  %v249_v10 = vld [vmem:[%s738_s3 + $0xb0] sm:$0xff]  ;;  %v449_v12 = vpack.c.bf16 %v80_v3, %v78_v2  ;;  %v451_v13 = vpack.c.bf16 %v85_v6, %v83_v4 }
  0x27   :  { %v82_v14 = vld [vmem:[#allocation3 + $0x120] sm:$0xff]  ;;  %v84_v15 = vld [vmem:[#allocation3 + $0x130] sm:$0xff]  ;;  %v87_v16 = vld [vmem:[#allocation3 + $0x148] sm:$0xff]  ;;  %v489_v17 = vpack.c.bf16 %v232_v9, %v231_v8  ;;  %v491_v19 = vpack.c.bf16 %v250_v11, %v249_v10 }
  0x28   :  { %v89_v18 = vld [vmem:[#allocation3 + $0x158] sm:$0xff]  ;;  %v233_v20 = vld [vmem:[%s738_s3 + $0x30] sm:$0xff]  ;;  %v252_v23 = vld [vmem:[%s738_s3 + $0xc8] sm:$0xff]  ;;  %v453_v24 = vpack.c.bf16 %v84_v15, %v82_v14 }
  0x29   :  { %434 = vmatpush1.bf16.msra.mxu0 %v433_v32  ;;  %486 = vmatpush3.bf16.msra.mxu1 %v485_v5  ;;  %v234_v21 = vld [vmem:[%s738_s3 + $0x38] sm:$0xff]  ;;  %v251_v22 = vld [vmem:[%s738_s3 + $0xc0] sm:$0xff]  ;;  %v455_v25 = vpack.c.bf16 %v89_v18, %v87_v16  ;;  %v91_v28 = vld [vmem:[#allocation3 + $0x168] sm:$0xff] }
  0x2a   :  { %436 = vmatprep.subr.bf16.mxu0 %v435_v33  ;;  %488 = vmatprep.subr.bf16.mxu1 %v487_v7  ;;  %v86_v26 = vld [vmem:[#allocation3 + $0x140] sm:$0xff]  ;;  %v88_v27 = vld [vmem:[#allocation3 + $0x150] sm:$0xff]  ;;  %v493_v29 = vpack.c.bf16 %v234_v21, %v233_v20  ;;  %v93_v30 = vld [vmem:[#allocation3 + $0x178] sm:$0xff]  ;;  %v495_v31 = vpack.c.bf16 %v252_v23, %v251_v22 }
  0x2b   :  { %v235_v32 = vld [vmem:[%s738_s3 + $0x40] sm:$0xff]  ;;  %v236_v33 = vld [vmem:[%s738_s3 + $0x48] sm:$0xff]  ;;  %v253_v34 = vld [vmem:[%s738_s3 + $0xd0] sm:$0xff]  ;;  %v457_v36 = vpack.c.bf16 %v88_v27, %v86_v26  ;;  %v459_v37 = vpack.c.bf16 %v93_v30, %v91_v28  ;;  %v112_v27 = vlaneseq }
  0x2c   :  { %v254_v35 = vld [vmem:[%s738_s3 + $0xd8] sm:$0xff]  ;;  %v95_v40 = vld [vmem:[#allocation3 + $0x188] sm:$0xff]  ;;  %v497_v41 = vpack.c.bf16 %v236_v33, %v235_v32  ;;  %v255_v46 = vld [vmem:[%s738_s3 + $0xe0] sm:$0xff] }
  0x2d   :  { %438 = vmatpush1.bf16.msra.mxu0 %v437_v38  ;;  %490 = vmatpush3.bf16.msra.mxu1 %v489_v17  ;;  %v90_v38 = vld [vmem:[#allocation3 + $0x160] sm:$0xff]  ;;  %v97_v42 = vld [vmem:[#allocation3 + $0x198] sm:$0xff]  ;;  %v499_v43 = vpack.c.bf16 %v254_v35, %v253_v34  ;;  %v237_v44 = vld [vmem:[%s738_s3 + $0x50] sm:$0xff]  ;;  %v113_v28 = vshrl.u32 %v112_v27, 7 }
  0x2e   :  { %440 = vmatprep.subr.bf16.mxu0 %v439_v39  ;;  %492 = vmatprep.subr.bf16.mxu1 %v491_v19  ;;  %v92_v39 = vld [vmem:[#allocation3 + $0x170] sm:$0xff]  ;;  %v463_v49 = vpack.c.bf16 %v97_v42, %v95_v40  ;;  %v94_v50 = vld [vmem:[#allocation3 + $0x180] sm:$0xff]  ;;  %v99_v53 = vld [vmem:[#allocation3 + $0x1a8] sm:$0xff] }
  0x2f   :  { %v238_v45 = vld [vmem:[%s738_s3 + $0x58] sm:$0xff]  ;;  %v461_v48 = vpack.c.bf16 %v92_v39, %v90_v38  ;;  %v98_v58 = vld [vmem:[#allocation3 + $0x1a0] sm:$0xff]  ;;  %v103_v60 = vld [vmem:[#allocation3 + $0x1c8] sm:$0xff] }
  0x30   :  { %v501_v52 = vpack.c.bf16 %v238_v45, %v237_v44  ;;  %v101_v54 = vld [vmem:[#allocation3 + $0x1b8] sm:$0xff]  ;;  %v100_v59 = vld [vmem:[#allocation3 + $0x1b0] sm:$0xff]  ;;  %v107_v2 = vld [vmem:[#allocation3 + $0x1e8] sm:$0xff] }
  0x31   :  { %442 = vmatpush1.bf16.msra.mxu0 %v441_v47  ;;  %494 = vmatpush3.bf16.msra.mxu1 %v493_v29  ;;  %v256_v47 = vld [vmem:[%s738_s3 + $0xe8] sm:$0xff]  ;;  %v467_v57 = vpack.c.bf16 %v101_v54, %v99_v53  ;;  %v105_v61 = vld [vmem:[#allocation3 + $0x1d8] sm:$0xff]  ;;  %v469_v62 = vpack.c.bf16 %v100_v59, %v98_v58  ;;  %v108_v7 = vld [vmem:[#allocation3 + $0x1f0] sm:$0xff]  ;;  %v114_v29 = vsub.s32 0, %v113_v28 }
  0x32   :  { %444 = vmatprep.subr.bf16.mxu0 %v443_v51  ;;  %496 = vmatprep.subr.bf16.mxu1 %v495_v31  ;;  %v96_v51 = vld [vmem:[#allocation3 + $0x190] sm:$0xff]  ;;  %v503_v55 = vpack.c.bf16 %v256_v47, %v255_v46  ;;  %v471_v63 = vpack.c.bf16 %v105_v61, %v103_v60  ;;  %v109_v3 = vld [vmem:[#allocation3 + $0x1f8] sm:$0xff]  ;;  %v106_v6 = vld [vmem:[#allocation3 + $0x1e0] sm:$0xff]  ;;  %v118_v31 = vsub.s32 1, %v113_v28 }
  0x33   :  { %v465_v56 = vpack.c.bf16 %v96_v51, %v94_v50  ;;  %v475_v5 = vpack.c.bf16 %v109_v3, %v107_v2  ;;  %v477_v8 = vpack.c.bf16 %v108_v7, %v106_v6  ;;  %v36_v9 = vld [vmem:[%s735_s0] sm:$0xff]  ;;  %v39_v10 = vld [vmem:[%s735_s0 + $0x18] sm:$0xff]  ;;  %v38_v11 = vld [vmem:[%s735_s0 + $0x10] sm:$0xff] }
  0x34   :  { %v43_v14 = vld [vmem:[%s735_s0 + $0x38] sm:$0xff]  ;;  %v42_v15 = vld [vmem:[%s735_s0 + $0x30] sm:$0xff]  ;;  %v45_v16 = vld [vmem:[%s735_s0 + $0x48] sm:$0xff] }
  0x35   :  { %446 = vmatpush1.bf16.msra.mxu0 %v445_v0  ;;  %498 = vmatpush3.bf16.msra.mxu1 %v497_v41  ;;  %v102_v0 = vld [vmem:[#allocation3 + $0x1c0] sm:$0xff]  ;;  %v257_v21 = vld [vmem:[%s738_s3 + $0xf0] sm:$0xff]  ;;  %v258_v22 = vld [vmem:[%s738_s3 + $0xf8] sm:$0xff] }
  0x36   :  { %448 = vmatprep.subr.bf16.mxu0 %v447_v1  ;;  %500 = vmatprep.subr.bf16.mxu1 %v499_v43  ;;  %v104_v1 = vld [vmem:[#allocation3 + $0x1d0] sm:$0xff]  ;;  %v44_v17 = vld [vmem:[%s735_s0 + $0x40] sm:$0xff]  ;;  %v240_v19 = vld [vmem:[%s738_s3 + $0x68] sm:$0xff]  ;;  %v507_v23 = vpack.c.bf16 %v258_v22, %v257_v21 }
  0x37   :  { %v473_v4 = vpack.c.bf16 %v104_v1, %v102_v0  ;;  %v239_v18 = vld [vmem:[%s738_s3 + $0x60] sm:$0xff] }
  0x38   :  { %v505_v20 = vpack.c.bf16 %v240_v19, %v239_v18  ;;  %v110_v30 = vld [vmem:[%s737_s2] sm:$0x3] }
  0x39   :  { %450 = vmatpush1.bf16.msra.mxu0 %v449_v12  ;;  %502 = vmatpush3.bf16.msra.mxu1 %v501_v52  ;;  %v41_v12 = vld [vmem:[%s735_s0 + $0x28] sm:$0xff]  ;;  %v115_v32 = vrot.slane %v110_v30, %v114_v29  ;;  %v119_v33 = vrot.slane %v110_v30, %v118_v31  ;;  %v367_v1 = vld [vmem:[#allocation2] ss:$0 sm:$0xff] }
  0x3a   :  { %452 = vmatprep.subr.bf16.mxu0 %v451_v13  ;;  %504 = vmatprep.subr.bf16.mxu1 %v503_v55  ;;  %v40_v13 = vld [vmem:[%s735_s0 + $0x20] sm:$0xff] }
  0x3d   :  { %454 = vmatpush1.bf16.msra.mxu0 %v453_v24  ;;  %506 = vmatpush3.bf16.msra.mxu1 %v505_v20  ;;  %v241_v24 = vld [vmem:[%s738_s3 + $0x70] sm:$0xff] }
  0x3e   :  { %456 = vmatprep.subr.bf16.mxu0 %v455_v25  ;;  %v242_v25 = vld [vmem:[%s738_s3 + $0x78] sm:$0xff]  ;;  %508 = vmatprep.subr.bf16.mxu1 %v507_v23 }
  0x3f   :  { %v509_v26 = vpack.c.bf16 %v242_v25, %v241_v24 }
  0x41   :  { %458 = vmatpush1.bf16.msra.mxu0 %v457_v36  ;;  %510 = vmatpush3.bf16.msra.mxu1 %v509_v26 }
  0x42   :  { %460 = vmatprep.subr.bf16.mxu0 %v459_v37 }
  0x45   :  { %462 = vmatpush1.bf16.msra.mxu0 %v461_v48 }
  0x46   :  { %464 = vmatprep.subr.bf16.mxu0 %v463_v49 }
  0x49   :  { %466 = vmatpush1.bf16.msra.mxu0 %v465_v56 }
  0x4a   :  { %468 = vmatprep.subr.bf16.mxu0 %v467_v57 }
  0x4d   :  { %470 = vmatpush1.bf16.msra.mxu0 %v469_v62 }
  0x4e   :  { %472 = vmatprep.subr.bf16.mxu0 %v471_v63 }
  0x51   :  { %474 = vmatpush1.bf16.msra.mxu0 %v473_v4 }
  0x52   :  { %476 = vmatprep.subr.bf16.mxu0 %v475_v5 }
  0x55   :  { %478 = vmatpush1.bf16.msra.mxu0 %v477_v8 }
  0x58   :  { %187 = vmatmul.mubr.f32.vlgmr.msra.gmra.mrb[0].mxu0 %v36_v9 }
  0x59   :  { %192 = vmatprep.mubr.f32.mxu0 %v39_v10 }
  0x5c   :  { %193 = vmatmul.mubr.f32.gmra.mrb[2].mxu0 %v38_v11 }
  0x5d   :  { %198 = vmatprep.mubr.f32.mxu0 %v41_v12 }
  0x60   :  { %199 = vmatmul.mubr.f32.gmra.mrb[4].mxu0 %v40_v13 }
  0x61   :  { %204 = vmatprep.mubr.f32.mxu0 %v43_v14 }
  0x64   :  { %205 = vmatmul.mubr.f32.gmra.mrb[6].mxu0 %v42_v15 }
  0x65   :  { %210 = vmatprep.mubr.f32.mxu0 %v45_v16 }
  0x68   :  { %211 = vmatmul.mubr.f32.gmra.mrb[8].mxu0 %v44_v17 }
 0x12b   :  { %v188_v34 = vpop.f32.mrb[0].mxu0 }
 0x12c   :  { %v189_v35 = vadd.f32 %v188_v34, %v115_v32  ;;  %v190_v36 = vpop.f32.mrb[1].mxu0 }
 0x12d   :  { %v191_v37 = vadd.f32 %v190_v36, %v119_v33 }
 0x12e   :  { %v217_v40 = vmax.f32 %v189_v35, 0.0 }
 0x12f   :  { %v194_v38 = vpop.f32.mrb[2].mxu0  ;;  %v218_v39 = vmax.f32 %v191_v37, 0.0 }
 0x130   :  { %v195_v41 = vadd.f32 %v194_v38, %v115_v32  ;;  %v196_v42 = vpop.f32.mrb[3].mxu0 }
 0x131   :  { %v197_v43 = vadd.f32 %v196_v42, %v119_v33  ;;  %330 = vmatprep.mubr.f32.mxu1 %v218_v39 }
 0x132   :  { %331 = vmatmul.mubr.f32.vlgmr.msra.gmra.mrb[0].mxu1 %v217_v40  ;;  %v219_v46 = vmax.f32 %v195_v41, 0.0 }
 0x133   :  { %v220_v44 = vmax.f32 %v197_v43, 0.0  ;;  %v200_v45 = vpop.f32.mrb[4].mxu0 }
 0x134   :  { %v201_v47 = vadd.f32 %v200_v45, %v115_v32  ;;  %v202_v48 = vpop.f32.mrb[5].mxu0 }
 0x135   :  { %v203_v49 = vadd.f32 %v202_v48, %v119_v33  ;;  %335 = vmatprep.mubr.f32.mxu1 %v220_v44 }
 0x136   :  { %336 = vmatmul.mubr.f32.gmra.mrb[2].mxu1 %v219_v46  ;;  %v221_v52 = vmax.f32 %v201_v47, 0.0 }
 0x137   :  { %v222_v50 = vmax.f32 %v203_v49, 0.0  ;;  %v206_v51 = vpop.f32.mrb[6].mxu0 }
 0x138   :  { %v207_v53 = vadd.f32 %v206_v51, %v115_v32  ;;  %v208_v54 = vpop.f32.mrb[7].mxu0 }
 0x139   :  { %v209_v55 = vadd.f32 %v208_v54, %v119_v33  ;;  %340 = vmatprep.mubr.f32.mxu1 %v222_v50 }
 0x13a   :  { %341 = vmatmul.mubr.f32.gmra.mrb[4].mxu1 %v221_v52  ;;  %v223_v58 = vmax.f32 %v207_v53, 0.0 }
 0x13b   :  { %v224_v56 = vmax.f32 %v209_v55, 0.0  ;;  %v212_v57 = vpop.f32.mrb[8].mxu0 }
 0x13c   :  { %v213_v59 = vadd.f32 %v212_v57, %v115_v32  ;;  %v214_v60 = vpop.f32.mrb[9].mxu0 }
 0x13d   :  { %v215_v61 = vadd.f32 %v214_v60, %v119_v33  ;;  %345 = vmatprep.mubr.f32.mxu1 %v224_v56 }
 0x13e   :  { %346 = vmatmul.mubr.f32.gmra.mrb[6].mxu1 %v223_v58  ;;  %v225_v63 = vmax.f32 %v213_v59, 0.0 }
 0x13f   :  { %v226_v62 = vmax.f32 %v215_v61, 0.0 }
 0x141   :  { %350 = vmatprep.mubr.f32.mxu1 %v226_v62 }
 0x142   :  { %351 = vmatmul.mubr.f32.gmra.mrb[8].mxu1 %v225_v63 }
 0x205   :  { %v400_v0 = vpop.f32.mrb[0].mxu1 }
 0x206   :  { %v401_v2 = vpop.f32.mrb[1].mxu1 }
 0x207   :  { %v402_v3 = vadd.f32 %v401_v2, %v400_v0 }
 0x209   :  { %v333_v4 = vadd.f32 %v402_v3, %v367_v1  ;;  %v403_v5 = vpop.f32.mrb[2].mxu1 }
 0x20a   :  { %v404_v6 = vpop.f32.mrb[3].mxu1 }
 0x20b   :  { %357 = vst.msk [vmem:[%s740_s5] sm:$0xff] %vm356_vm0, %v333_v4  ;;  %v405_v7 = vadd.f32 %v404_v6, %v403_v5 }
 0x20d   :  { %v338_v8 = vadd.f32 %v405_v7, %v367_v1  ;;  %v406_v9 = vpop.f32.mrb[4].mxu1 }
 0x20e   :  { %v407_v10 = vpop.f32.mrb[5].mxu1 }
 0x20f   :  { %358 = vst.msk [vmem:[%s740_s5 + $0x8] sm:$0xff] %vm356_vm0, %v338_v8  ;;  %v408_v11 = vadd.f32 %v407_v10, %v406_v9 }
 0x211   :  { %v343_v12 = vadd.f32 %v408_v11, %v367_v1  ;;  %v409_v13 = vpop.f32.mrb[6].mxu1 }
 0x212   :  { %v410_v14 = vpop.f32.mrb[7].mxu1 }
 0x213   :  { %359 = vst.msk [vmem:[%s740_s5 + $0x10] sm:$0xff] %vm356_vm0, %v343_v12  ;;  %v411_v15 = vadd.f32 %v410_v14, %v409_v13 }
 0x215   :  { %v348_v16 = vadd.f32 %v411_v15, %v367_v1  ;;  %v412_v17 = vpop.f32.mrb[8].mxu1 }
 0x216   :  { %v413_v18 = vpop.f32.mrb[9].mxu1 }
 0x217   :  { %360 = vst.msk [vmem:[%s740_s5 + $0x18] sm:$0xff] %vm356_vm0, %v348_v16  ;;  %v414_v19 = vadd.f32 %v413_v18, %v412_v17 }
 0x219   :  { %v353_v20 = vadd.f32 %v414_v19, %v367_v1 }
 0x21b   :  { %361 = vst.msk [vmem:[%s740_s5 + $0x20] sm:$0xff] %vm356_vm0, %v353_v20 }
 0x21c   :  { %366 = vsyncpa [#allocation4], 1 }

</bundles_post_ra>
